<compile_context>
chip_gen: v7x
topology: tpu7x:2x2x1
jax: 0.10.0
libtpu: 0.0.40
codegen_flags: <defaults>
</compile_context>

<pallas_src>
import numpy as np
import jax
import jax.numpy as jnp
from jax.experimental import pallas as pl
from jax.experimental.pallas import tpu as pltpu


# --------------------- generation-aware VMEM budgeting ---------------------- #

_VMEM_CFG = None


def _vmem_config():
    """(working_set_budget_bytes, vmem_limit_bytes) based on the TPU generation."""
    global _VMEM_CFG
    if _VMEM_CFG is None:
        cap = 64 << 20
        try:
            cap = int(getattr(pltpu.get_tpu_info(), "vmem_capacity_bytes", cap))
        except Exception:
            pass
        if cap >= (96 << 20):          # v5e / v6e: 128 MiB physical VMEM
            budget = 48 << 20
        else:                          # v7x: 64 MiB physical VMEM
            budget = 22 << 20
        limit = int(min(budget + (16 << 20), max(cap - (8 << 20), budget)))
        _VMEM_CFG = (budget, limit)
    return _VMEM_CFG


# ----------------------------- 1x1 conv kernel ------------------------------ #

def _conv1x1_kernel(x_ref, w_ref, b_ref, o_ref):
    # x: (TM, Cin), w: (Cin, Cout), b: (1, Cout) -> o: (TM, Cout)
    acc = jnp.dot(x_ref[...], w_ref[...], preferred_element_type=jnp.float32)
    o_ref[...] = (acc + b_ref[...]).astype(o_ref.dtype)


def conv1x1(x2d, w, b):
    """Pointwise (1x1) conv as a tiled matmul. x2d: (M, Cin), w: (Cin, Cout)."""
    M, Cin = x2d.shape
    Cout = w.shape[1]
    budget, vmem_limit = _vmem_config()
    isz_x = jnp.dtype(x2d.dtype).itemsize
    isz_w = jnp.dtype(w.dtype).itemsize

    # honest per-row cost: x + out double-buffered + ~1 extra f32 out temp
    fixed = 2 * Cin * Cout * isz_w + 2 * Cout * 4
    per_row = 2 * Cin * isz_x + 2 * Cout * 4 + 2 * Cout * 4
    tm = max(32, (budget - fixed) // max(per_row, 1))
    tm = min(tm, 1024, M)
    if tm < M:
        tm = max(32, (tm // 32) * 32)   # multiple of 32 rows covers all dtypes

    b2 = b.reshape(1, Cout).astype(jnp.float32)

    flops = 2 * M * Cin * Cout
    bytes_accessed = M * Cin * isz_x + Cin * Cout * isz_w + Cout * 4 + M * Cout * 4

    # No jnp.pad / out[:M]: Pallas handles the partial edge block itself.
    return pl.pallas_call(
        _conv1x1_kernel,
        out_shape=jax.ShapeDtypeStruct((M, Cout), jnp.float32),
        grid=(pl.cdiv(M, tm),),
        in_specs=[
            pl.BlockSpec((tm, Cin), lambda i: (i, 0)),
            pl.BlockSpec((Cin, Cout), lambda i: (0, 0)),
            pl.BlockSpec((1, Cout), lambda i: (0, 0)),
        ],
        out_specs=pl.BlockSpec((tm, Cout), lambda i: (i, 0)),
        compiler_params=pltpu.CompilerParams(
            dimension_semantics=("parallel",),
            vmem_limit_bytes=vmem_limit),
        cost_estimate=pl.CostEstimate(flops=int(flops), transcendentals=0,
                                      bytes_accessed=int(bytes_accessed)),
    )(x2d, w, b2)


# ------------- fused: lateral conv + bilinear-2x upsample + add ------------- #
#
# PyTorch bilinear 2x, align_corners=False, reduces (per axis, clamping folded
# into fixed weights):
#   out[2p]   = 0.25 * x[max(p-1, 0)] + 0.75 * x[p]
#   out[2p+1] = 0.75 * x[p]           + 0.25 * x[min(p+1, S-1)]
# Separable: W shift-and-blend first on the (THs+2) haloed prev rows, then the
# H interleave.  The one-row halos arrive as their own (block-size-1) inputs
# whose index_maps do the clamping, so the kernel has no boundary branches.

def _fused_lateral_topdown_kernel(x_ref, w_ref, b_ref, pc_ref, pu_ref, pd_ref,
                                  o_ref):
    # x_ref:  (1, TH, Wb, Cin)     lower-level input block (NHWC)
    # w_ref:  (Cin, Cout)          lateral 1x1 conv weight
    # b_ref:  (1, Cout)            bias
    # pc_ref: (1, THs, Ws, Cout)   prev rows [P0, P0+THs)       (center)
    # pu_ref: (1, 1, Ws, Cout)     prev row  max(P0-1, 0)       (upper halo)
    # pd_ref: (1, 1, Ws, Cout)     prev row  min(P0+THs, Hs-1)  (lower halo)
    # o_ref:  (1, TH, Wb, Cout)
    _, TH, Wb, Cin = x_ref.shape
    _, THs, Ws, Cout = pc_ref.shape

    # ---- lateral 1x1 conv on this spatial block (MXU, f32 accumulate) ----
    x2 = x_ref[0].reshape(TH * Wb, Cin)
    lat = jnp.dot(x2, w_ref[...], preferred_element_type=jnp.float32) + b_ref[...]
    lat = lat.reshape(TH, Wb, Cout)

    # haloed prev window (THs+2, Ws, Cout); edge clamping already handled by
    # the halo BlockSpec index_maps.
    hal = jnp.concatenate([pu_ref[0].astype(jnp.float32),
                           pc_ref[0].astype(jnp.float32),
                           pd_ref[0].astype(jnp.float32)], axis=0)

    # ---- W pass first (half the blends of H-first): shift + blend ----
    left = jnp.concatenate([hal[:, :1], hal[:, :-1]], axis=1)    # hal[:, max(q-1,0)]
    right = jnp.concatenate([hal[:, 1:], hal[:, -1:]], axis=1)   # hal[:, min(q+1,Ws-1)]
    w_even = 0.25 * left + 0.75 * hal
    w_odd = 0.75 * hal + 0.25 * right
    # interleave along W: (THs+2, Ws, 2, Cout) -> (THs+2, Wb, Cout)
    halw = jnp.stack([w_even, w_odd], axis=2).reshape(THs + 2, Wb, Cout)

    # ---- H pass: blend haloed rows, then interleave to TH rows ----
    up = halw[:THs]            # prev[p-1]  (clamped)
    mid = halw[1:THs + 1]      # prev[p]
    dn = halw[2:]              # prev[p+1]  (clamped)
    h_even = 0.25 * up + 0.75 * mid
    h_odd = 0.75 * mid + 0.25 * dn
    # interleave along H: (THs, 2, Wb, Cout) -> (TH, Wb, Cout)
    up2x = jnp.stack([h_even, h_odd], axis=1).reshape(TH, Wb, Cout)

    o_ref[0] = (lat + up2x).astype(o_ref.dtype)


def fused_lateral_topdown(x_nhwc, w, b, prev):
    """out = conv1x1(x_nhwc; w, b) + bilinear_upsample_2x(prev)   (all NHWC).

    x_nhwc: (N, Hb, Wb, Cin);  prev: (N, Hs, Ws, Cout) with Hb = 2*Hs, Wb = 2*Ws.
    """
    N, Hb, Wb, Cin = x_nhwc.shape
    Np, Hs, Ws, Cout = prev.shape
    assert N == Np and Hb == 2 * Hs and Wb == 2 * Ws, "levels must differ by 2x"

    budget, vmem_limit = _vmem_config()
    isz_x = jnp.dtype(x_nhwc.dtype).itemsize
    isz_w = jnp.dtype(w.dtype).itemsize

    def blk_bytes(th_):
        ths_ = th_ // 2
        x_blk = 2 * th_ * Wb * Cin * isz_x            # double-buffered input
        o_blk = 2 * th_ * Wb * Cout * 4               # double-buffered output
        p_blk = 2 * ths_ * Ws * Cout * 4              # prev center block
        halo = 2 * 2 * Ws * Cout * 4                  # two 1-row halos
        wts = 2 * Cin * Cout * isz_w + 2 * Cout * 4   # weight + bias
        tmp = 4 * th_ * Wb * Cout * 4                 # in-kernel f32 temporaries
        return x_blk + o_blk + p_blk + halo + wts + tmp

    # largest even divisor of Hb that fits the budget; when N == 1 prefer a
    # tile that still leaves >=2 grid points so both v7x TensorCores get work.
    divs = [d for d in range(Hb, 1, -1) if Hb % d == 0 and d % 2 == 0]
    pref = [d for d in divs if (N > 1 or Hb // d >= 2)] or divs
    th = next((d for d in pref if blk_bytes(d) <= budget), None)
    if th is None:
        th = next((d for d in divs if blk_bytes(d) <= budget), 2)
    ths = th // 2

    b2 = b.reshape(1, Cout).astype(jnp.float32)

    flops = 2 * N * Hb * Wb * Cin * Cout + 12 * N * Hb * Wb * Cout
    prev_bytes = N * (Hb // th) * (ths + 2) * Ws * Cout * 4
    bytes_accessed = (N * Hb * Wb * Cin * isz_x + Cin * Cout * isz_w + Cout * 4
                      + prev_bytes + N * Hb * Wb * Cout * 4)

    return pl.pallas_call(
        _fused_lateral_topdown_kernel,
        out_shape=jax.ShapeDtypeStruct((N, Hb, Wb, Cout), jnp.float32),
        grid=(N, Hb // th),
        in_specs=[
            pl.BlockSpec((1, th, Wb, Cin), lambda n, h: (n, h, 0, 0)),
            pl.BlockSpec((Cin, Cout), lambda n, h: (0, 0)),
            pl.BlockSpec((1, Cout), lambda n, h: (0, 0)),
            # prev center rows [h*THs, (h+1)*THs) -- H-tiled, auto-pipelined.
            pl.BlockSpec((1, ths, Ws, Cout), lambda n, h: (n, h, 0, 0)),
            # 1-row halos: block size 1 along H => block index == row index, so
            # the index_map performs PyTorch's edge clamping directly.
            pl.BlockSpec((1, 1, Ws, Cout),
                         lambda n, h: (n, jnp.maximum(h * ths - 1, 0), 0, 0)),
            pl.BlockSpec((1, 1, Ws, Cout),
                         lambda n, h: (n, jnp.minimum(h * ths + ths, Hs - 1), 0, 0)),
        ],
        out_specs=pl.BlockSpec((1, th, Wb, Cout), lambda n, h: (n, h, 0, 0)),
        compiler_params=pltpu.CompilerParams(
            dimension_semantics=("parallel", "parallel"),
            vmem_limit_bytes=vmem_limit),
        cost_estimate=pl.CostEstimate(flops=int(flops), transcendentals=0,
                                      bytes_accessed=int(bytes_accessed)),
    )(x_nhwc, w, b2, prev, prev, prev)


# -------------------------------- FPN module -------------------------------- #

class FPNPallas:
    """Mirror of the PyTorch FPN: lateral 1x1 ConvModules (no norm / no act,
    bias=True, xavier-uniform weights, zero bias) + top-down bilinear fusion.
    matmul_dtype defaults to bf16 (f32 accumulation); outputs are f32."""

    def __init__(self, in_channels, out_channels, num_outs,
                 start_level=0, end_level=-1, key=None,
                 matmul_dtype=jnp.bfloat16):
        assert isinstance(in_channels, list)
        self.in_channels = in_channels
        self.out_channels = out_channels
        self.num_ins = len(in_channels)
        self.num_outs = num_outs
        if end_level == -1:
            self.backbone_end_level = self.num_ins
            assert num_outs >= self.num_ins - start_level
        else:
            self.backbone_end_level = end_level
            assert end_level <= len(in_channels)
            assert num_outs == end_level - start_level
        self.start_level = start_level
        self.end_level = end_level
        self.matmul_dtype = matmul_dtype

        if key is None:
            key = jax.random.PRNGKey(0)
        keys = jax.random.split(key, self.backbone_end_level - self.start_level)
        self.params = []
        for idx, i in enumerate(range(self.start_level, self.backbone_end_level)):
            cin = in_channels[i]
            bound = float(np.sqrt(6.0 / (cin + out_channels)))   # xavier uniform
            w = jax.random.uniform(keys[idx], (cin, out_channels), jnp.float32,
                                   -bound, bound)
            b = jnp.zeros((out_channels,), jnp.float32)           # xavier_init bias=0
            self.params.append((w, b))

    def __call__(self, inputs):
        assert len(inputs) == len(self.in_channels)
        L = self.backbone_end_level - self.start_level
        # NCHW -> NHWC + cast (channels in lanes).
        # TODO(synk): keep the surrounding model NHWC/bf16 end-to-end to drop
        # these pure-XLA transpose/cast passes over the largest tensors.
        xs = [jnp.transpose(inputs[i + self.start_level],
                            (0, 2, 3, 1)).astype(self.matmul_dtype)
              for i in range(L)]

        laterals = [None] * L

        # top pyramid level: plain lateral 1x1 conv (no incoming top-down path)
        w, b = self.params[L - 1]
        x = xs[L - 1]
        N, H, W, Cin = x.shape
        laterals[L - 1] = conv1x1(
            x.reshape(N * H * W, Cin), w.astype(self.matmul_dtype), b,
        ).reshape(N, H, W, self.out_channels)

        # remaining levels, top-down: fused (conv + upsample2x(prev) + add)
        for i in range(L - 2, -1, -1):
            w, b = self.params[i]
            laterals[i] = fused_lateral_topdown(
                xs[i], w.astype(self.matmul_dtype), b, laterals[i + 1])

        # back to NCHW to match the PyTorch convention
        return tuple(jnp.transpose(l, (0, 3, 1, 2)) for l in laterals)


# ---------------------- pure-numpy reference (f64) -------------------------- #

def _interp_matrix(s_in, s_out):
    """1D bilinear weights matching PyTorch F.interpolate
    (mode='bilinear', align_corners=False, scale_factor=2)."""
    u = np.zeros((s_out, s_in), dtype=np.float64)
    scale = s_in / s_out
    for i in range(s_out):
        src = max((i + 0.5) * scale - 0.5, 0.0)
        i0 = int(np.floor(src))
        i1 = min(i0 + 1, s_in - 1)
        lam = src - i0
        u[i, i0] += 1.0 - lam
        u[i, i1] += lam
    return u


def _reference_fpn_numpy(inputs, params):
    lats = []
    for (w, b), x in zip(params, inputs):
        xn = np.transpose(np.asarray(x, np.float64), (0, 2, 3, 1))
        lats.append(xn @ np.asarray(w, np.float64) + np.asarray(b, np.float64))
    for i in range(len(lats) - 1, 0, -1):
        _, Hs, Ws, _ = lats[i].shape
        uh = _interp_matrix(Hs, 2 * Hs)
        uw = _interp_matrix(Ws, 2 * Ws)
        up = np.einsum('ip,jq,npqc->nijc', uh, uw, lats[i])
        lats[i - 1] = lats[i - 1] + up
    return tuple(np.transpose(l, (0, 3, 1, 2)) for l in lats)


# ---------------------------------- driver ---------------------------------- #

if __name__ == "__main__":
    key = jax.random.PRNGKey(0)
    k_in, k_par = jax.random.split(key)

    in_channels = [4, 8, 16]
    out_channels = 8
    # NCHW inputs, spatial strides of 2 between pyramid levels
    shapes = [(2, 4, 16, 16), (2, 8, 8, 8), (2, 16, 4, 4)]
    ks = jax.random.split(k_in, len(shapes))
    inputs = tuple(jax.random.normal(ks[i], s, jnp.float32)
                   for i, s in enumerate(shapes))

    def _quant(a, dt):
        # quantize the same way the kernel does (cast to matmul_dtype and back)
        return np.asarray(jnp.asarray(a, jnp.float32).astype(dt).astype(jnp.float32),
                          np.float64)

    for dt, tol in ((jnp.bfloat16, 2e-3), (jnp.float32, 1e-4)):
        fpn = FPNPallas(in_channels, out_channels, num_outs=3, key=k_par,
                        matmul_dtype=dt)
        outs = jax.block_until_ready(fpn(inputs))

        assert outs[0].shape == (2, out_channels, 16, 16)
        assert outs[1].shape == (2, out_channels, 8, 8)
        assert outs[2].shape == (2, out_channels, 4, 4)
        assert all(o.dtype == jnp.float32 for o in outs)

        # f64 numpy reference on identically-quantized x/w -> tight tolerance
        q_inputs = [_quant(x, dt) for x in inputs]
        q_params = [(_quant(w, dt), np.asarray(b, np.float64)) for w, b in fpn.params]
        refs = _reference_fpn_numpy(q_inputs, q_params)
        for o, r in zip(outs, refs):
            np.testing.assert_allclose(np.asarray(o, np.float64), r,
                                       rtol=tol, atol=tol)

    print("KERNEL_OK")
</pallas_src>

<mosaic_0001>
module attributes {stable_mosaic.version = 11 : i64} {
  func.func @_conv1x1_kernel(%arg0: i32, %arg1: memref<32x16xbf16, #tpu.memory_space<vmem>>, %arg2: memref<16x8xbf16, #tpu.memory_space<vmem>>, %arg3: memref<1x8xf32, #tpu.memory_space<vmem>>, %arg4: memref<32x8xf32, #tpu.memory_space<vmem>>) attributes {dimension_semantics = [#tpu.dimension_semantics<parallel>], iteration_bounds = array<i64: 1>, scalar_prefetch = 0 : i64, scratch_operands = 0 : i64, tpu.core_type = #tpu.core_type<tc>, window_params = [{transform_indices = @transform_0, window_bounds = array<i64: 32, 16>}, {pipeline_mode = #tpu.pipeline_mode<synchronous>, transform_indices = @transform_1, window_bounds = array<i64: 16, 8>}, {pipeline_mode = #tpu.pipeline_mode<synchronous>, transform_indices = @transform_2, window_bounds = array<i64: 1, 8>}, {transform_indices = @transform_3, window_bounds = array<i64: 32, 8>}]} {
    %c0 = arith.constant 0 : index
    %c0_0 = arith.constant 0 : index
    %0 = vector.load %arg1[%c0, %c0_0] : memref<32x16xbf16, #tpu.memory_space<vmem>>, vector<32x16xbf16>
    %c0_1 = arith.constant 0 : index
    %c0_2 = arith.constant 0 : index
    %1 = vector.load %arg2[%c0_1, %c0_2] : memref<16x8xbf16, #tpu.memory_space<vmem>>, vector<16x8xbf16>
    %cst = arith.constant dense<0.000000e+00> : vector<32x8xf32>
    %2 = tpu.matmul %0, %1, %cst {dimension_numbers = #tpu.dot_dimension_numbers<[1], [0], [0], [1], [0, 0, 1, 1], [], []>} : vector<32x16xbf16>, vector<16x8xbf16>, vector<32x8xf32> -> vector<32x8xf32>
    %c0_3 = arith.constant 0 : index
    %c0_4 = arith.constant 0 : index
    %3 = vector.load %arg3[%c0_3, %c0_4] : memref<1x8xf32, #tpu.memory_space<vmem>>, vector<1x8xf32>
    %4 = vector.broadcast %3 : vector<1x8xf32> to vector<32x8xf32>
    %5 = arith.addf %2, %4 : vector<32x8xf32>
    %c0_5 = arith.constant 0 : index
    %c0_6 = arith.constant 0 : index
    %6 = vector.load %arg4[%c0_5, %c0_6] : memref<32x8xf32, #tpu.memory_space<vmem>>, vector<32x8xf32>
    tpu.vector_store %arg4[%c0_5, %c0_6], %5 {strides = array<i32>} : memref<32x8xf32, #tpu.memory_space<vmem>>, vector<32x8xf32>,
    return
  }
  func.func @transform_0(%arg0: i32) -> (i32, i32) {
    %c0_i32 = arith.constant 0 : i32
    %c0_i32_0 = arith.constant 0 : i32
    return %arg0, %c0_i32 : i32, i32
  }
  func.func @transform_1(%arg0: i32) -> (i32, i32) {
    %c0_i32 = arith.constant 0 : i32
    %c0_i32_0 = arith.constant 0 : i32
    %c0_i32_1 = arith.constant 0 : i32
    return %c0_i32, %c0_i32_0 : i32, i32
  }
  func.func @transform_2(%arg0: i32) -> (i32, i32) {
    %c0_i32 = arith.constant 0 : i32
    %c0_i32_0 = arith.constant 0 : i32
    %c0_i32_1 = arith.constant 0 : i32
    return %c0_i32, %c0_i32_0 : i32, i32
  }
  func.func @transform_3(%arg0: i32) -> (i32, i32) {
    %c0_i32 = arith.constant 0 : i32
    %c0_i32_0 = arith.constant 0 : i32
    return %arg0, %c0_i32 : i32, i32
  }
}

</mosaic_0001>

<bundles_post_ra>
// kernel: tpu_custom_call.1
= control target key start
LH: loop header
LB: loop body
LE: loop exit
PB: predicated region body
PF: predicated region fallthrough
CT: control target
= control target key end

     0   :  { %vm44_vm0 = vcmask 130048   ;;  %vm100_vm1 = vcmask 64512   ;;  %s171_s1 = inlined_call_operand.vmem [shape: bf16[16,8], index: 1, kind: input, shape index: {}]   ;;  %s172_s0 = inlined_call_operand.vmem [shape: bf16[32,16], index: 0, kind: input, shape index: {}]   ;;  %s173_s2 = inlined_call_operand.vmem [shape: f32[1,8], index: 2, kind: input, shape index: {}]   ;;  %s174_s3 = inlined_call_operand.vmem [shape: f32[32,8], index: 3, kind: output, shape index: {}]  }
   0x1   :  { %v124_v0 = vld [vmem:[%s171_s1] sm:$0xff]   ;;  %v126_v2 = vld [vmem:[%s172_s0 + $0x8] sm:$0xff]  }
   0x2   :  { %v125_v1 = vld [vmem:[%s172_s0] sm:$0xff]   ;;  %118 = vmatprep.subr.bf16.mxu0 %v124_v0 }
   0x3   :  { %119 = vmatpush3.bf16.msra.mxu0 %v124_v0  ;;  %120 = vmatprep.mubr.msk.bf16.mxu0 %vm44_vm0, %v125_v1  ;;  %v109_v3 = vld [vmem:[%s173_s2] ss:$0 sm:$0xff] }
   0x6   :  { %121 = vmatmul.mubr.msk.bf16.vlgmr.msra.gmra.mrb[0].mxu0 %vm44_vm0, %v126_v2 }
  0xd9   :  { %v122_v4 = vpop.f32.mrb[0].mxu0 }
  0xda   :  { %v94_v5 = vadd.f32 %v122_v4, %v109_v3  ;;  %v85_v6 = vpop.f32.mrb[1].mxu0 }
  0xdb   :  { %v86_v7 = vadd.f32 %v109_v3, %v85_v6  ;;  %v123_v8 = vpop.f32.mrb[2].mxu0 }
  0xdc   :  { %103 = vst.msk [vmem:[%s174_s3 + $0x10] sm:$0xff] %vm100_vm1, %v94_v5  ;;  %v97_v9 = vadd.f32 %v123_v8, %v109_v3  ;;  %v88_v10 = vpop.f32.mrb[3].mxu0 }
  0xdd   :  { %101 = vst.msk [vmem:[%s174_s3] sm:$0xff] %vm100_vm1, %v86_v7  ;;  %v89_v11 = vadd.f32 %v109_v3, %v88_v10 }
  0xde   :  { %104 = vst.msk [vmem:[%s174_s3 + $0x18] sm:$0xff] %vm100_vm1, %v97_v9 }
  0xdf   :  { %102 = vst.msk [vmem:[%s174_s3 + $0x8] sm:$0xff] %vm100_vm1, %v89_v11 }

</bundles_post_ra>
